<compile_context>
chip_gen: v6e
topology: v6e:2x2x1
jax: 0.10.0
libtpu: 0.0.40
codegen_flags: <defaults>
</compile_context>

<pallas_src>
import math

import jax
import jax.numpy as jnp
from jax.experimental import pallas as pl
from jax.experimental.pallas import tpu as pltpu

# ----- model hyper-parameters (small, consistent with the module) -----------
B = 2            # batch
S = 8            # sequence length
HID = 32         # hid_dim
N_HEADS = 4
HEAD_DIM = HID // N_HEADS

BATCH_BLOCK = B              # batches per grid step; use 1 on v7x for 2 TCs
ROWS = BATCH_BLOCK * S       # activation rows handled per grid step


def mha_kernel(xqkv_ref, w_qkv_ref, b_qkv_ref, w_o_ref, b_o_ref,
               x_ref, attn_ref, ctx_ref):
    """One grid step == BATCH_BLOCK batch elements, fully fused MHA forward."""
    # Fused Q/K/V projection: [ROWS, 3H] @ [3H, 3H] block-diagonal weight
    # (pre-transposed; Q block pre-scaled by 1/sqrt(head_dim)) + fused bias.
    qkv = jnp.dot(xqkv_ref[...], w_qkv_ref[...],
                  preferred_element_type=jnp.float32) + b_qkv_ref[...]
    qkv3 = qkv.reshape(BATCH_BLOCK, S, 3 * HID)
    q = qkv3[:, :, 0 * HID:1 * HID]          # [BB, S, HID]  (already scaled)
    k = qkv3[:, :, 1 * HID:2 * HID]
    v = qkv3[:, :, 2 * HID:3 * HID]

    attn_flat = []
    for h in range(N_HEADS):                 # static, unrolled head loop
        lo, hi = h * HEAD_DIM, (h + 1) * HEAD_DIM
        qh = q[..., lo:hi]                   # [BB, S, d]
        kh = k[..., lo:hi]
        vh = v[..., lo:hi]

        # energy[b,q,k] = sum_d qh*kh ; scale already folded into W_q
        energy = jnp.einsum('bqd,bkd->bqk', qh, kh,
                            preferred_element_type=jnp.float32)
        m = jnp.max(energy, axis=-1, keepdims=True)
        e = jnp.exp(energy - m)
        attn = e * pl.reciprocal(jnp.sum(e, axis=-1, keepdims=True),
                                 approx=True)

        attn_flat.append(attn.reshape(BATCH_BLOCK, S * S))

        ctx_h = jnp.einsum('bqk,bkd->bqd', attn, vh,
                           preferred_element_type=jnp.float32)
        # write this head's context into its column slice of the VMEM scratch
        ctx_ref[:, lo:hi] = ctx_h.reshape(ROWS, HEAD_DIM)

    # single lane-dense attention store ([BB, NH*S*S] = [2, 256])
    attn_ref[...] = jnp.concatenate(attn_flat, axis=-1)

    # output projection (weight pre-transposed to [in, out])
    x_ref[...] = jnp.dot(ctx_ref[...], w_o_ref[...],
                         preferred_element_type=jnp.float32) + b_o_ref[...]


def multi_head_attention(query, key, value, params):
    """params: wq,bq,wk,bk,wv,bv,wo,bo with nn.Linear shapes W [H,H], b [1,H]."""
    inv_scale = 1.0 / math.sqrt(HEAD_DIM)

    # Pre-transpose weights to [in, out]; fold softmax scale into Q projection.
    wq_t = params["wq"].T * inv_scale
    wk_t = params["wk"].T
    wv_t = params["wv"].T
    wo_t = params["wo"].T
    bq = params["bq"] * inv_scale
    bk, bv, bo = params["bk"], params["bv"], params["bo"]

    # Block-diagonal fused QKV weight -> single [B*S,3H]x[3H,3H] GEMM in-kernel.
    w_qkv = jnp.zeros((3 * HID, 3 * HID), jnp.float32)
    w_qkv = w_qkv.at[0:HID, 0:HID].set(wq_t)
    w_qkv = w_qkv.at[HID:2 * HID, HID:2 * HID].set(wk_t)
    w_qkv = w_qkv.at[2 * HID:3 * HID, 2 * HID:3 * HID].set(wv_t)
    b_qkv = jnp.concatenate([bq, bk, bv], axis=-1)               # [1, 3H]

    # Fused, flattened activation input: [B*S, 3H]
    xqkv = jnp.concatenate([query, key, value], axis=-1).reshape(B * S, 3 * HID)

    const_w3 = pl.BlockSpec((3 * HID, 3 * HID), lambda i: (0, 0))
    const_b3 = pl.BlockSpec((1, 3 * HID), lambda i: (0, 0))
    const_w = pl.BlockSpec((HID, HID), lambda i: (0, 0))
    const_b = pl.BlockSpec((1, HID), lambda i: (0, 0))

    x_flat, attn_flat = pl.pallas_call(
        mha_kernel,
        out_shape=(
            jax.ShapeDtypeStruct((B * S, HID), jnp.float32),
            jax.ShapeDtypeStruct((B, N_HEADS * S * S), jnp.float32),
        ),
        grid_spec=pltpu.PrefetchScalarGridSpec(
            num_scalar_prefetch=0,
            grid=(B // BATCH_BLOCK,),
            in_specs=[
                pl.BlockSpec((ROWS, 3 * HID), lambda i: (i, 0)),   # fused qkv in
                const_w3, const_b3,                                # fused W/b
                const_w, const_b,                                  # fc_o W/b
            ],
            out_specs=[
                pl.BlockSpec((ROWS, HID), lambda i: (i, 0)),
                pl.BlockSpec((BATCH_BLOCK, N_HEADS * S * S), lambda i: (i, 0)),
            ],
            scratch_shapes=[pltpu.VMEM((ROWS, HID), jnp.float32)],
        ),
        compiler_params=pltpu.CompilerParams(
            dimension_semantics=("parallel",)),
    )(xqkv, w_qkv, b_qkv, wo_t, bo)

    x = x_flat.reshape(B, S, HID)
    attention = attn_flat.reshape(B, N_HEADS, S, S)
    return x, attention


def reference_mha(query, key, value, params):
    """Pure-JAX reference mirroring the PyTorch forward (eval mode)."""
    def lin(x, w, b):
        return x @ w.T + b[0]
    Q = lin(query, params["wq"], params["bq"])
    K = lin(key, params["wk"], params["bk"])
    V = lin(value, params["wv"], params["bv"])

    def split(x):  # [B,S,H] -> [B,nh,S,d]
        return x.reshape(B, S, N_HEADS, HEAD_DIM).transpose(0, 2, 1, 3)

    Qh, Kh, Vh = split(Q), split(K), split(V)
    energy = jnp.einsum("bhqd,bhkd->bhqk", Qh, Kh) / jnp.sqrt(jnp.float32(HEAD_DIM))
    attn = jax.nn.softmax(energy, axis=-1)
    ctx = jnp.einsum("bhqk,bhkd->bhqd", attn, Vh)
    ctx = ctx.transpose(0, 2, 1, 3).reshape(B, S, HID)
    x = lin(ctx, params["wo"], params["bo"])
    return x, attn


if __name__ == "__main__":
    key0 = jax.random.PRNGKey(0)
    keys = jax.random.split(key0, 12)

    # deterministic synthetic parameters (nn.Linear-shaped: W [H,H], b [1,H])
    def mk_w(k):
        return jax.random.normal(k, (HID, HID), jnp.float32) * 0.1

    def mk_b(k):
        return jax.random.normal(k, (1, HID), jnp.float32) * 0.01

    params = {
        "wq": mk_w(keys[0]), "bq": mk_b(keys[1]),
        "wk": mk_w(keys[2]), "bk": mk_b(keys[3]),
        "wv": mk_w(keys[4]), "bv": mk_b(keys[5]),
        "wo": mk_w(keys[6]), "bo": mk_b(keys[7]),
    }

    query = jax.random.normal(keys[8], (B, S, HID), jnp.float32)
    key_in = jax.random.normal(keys[9], (B, S, HID), jnp.float32)
    value = jax.random.normal(keys[10], (B, S, HID), jnp.float32)

    x, attn = multi_head_attention(query, key_in, value, params)
    jax.block_until_ready((x, attn))

    # correctness check vs pure-JAX reference (tolerance accounts for the
    # approximate EUP reciprocal used in the softmax normalisation)
    x_ref, attn_ref = reference_mha(query, key_in, value, params)
    assert jnp.allclose(x, x_ref, atol=5e-3, rtol=5e-3), "output mismatch"
    assert jnp.allclose(attn, attn_ref, atol=5e-3, rtol=5e-3), "attention mismatch"

    print("KERNEL_OK")
</pallas_src>

<mosaic_0001>
module attributes {stable_mosaic.version = 11 : i64} {
  func.func @mha_kernel(%arg0: i32, %arg1: memref<16x96xf32, #tpu.memory_space<vmem>>, %arg2: memref<96x96xf32, #tpu.memory_space<vmem>>, %arg3: memref<1x96xf32, #tpu.memory_space<vmem>>, %arg4: memref<32x32xf32, #tpu.memory_space<vmem>>, %arg5: memref<1x32xf32, #tpu.memory_space<vmem>>, %arg6: memref<16x32xf32, #tpu.memory_space<vmem>>, %arg7: memref<2x256xf32, #tpu.memory_space<vmem>>, %arg8: memref<16x32xf32, #tpu.memory_space<vmem>>) attributes {dimension_semantics = [#tpu.dimension_semantics<parallel>], iteration_bounds = array<i64: 1>, scalar_prefetch = 0 : i64, scratch_operands = 1 : i64, tpu.core_type = #tpu.core_type<tc>, window_params = [{transform_indices = @transform_0, window_bounds = array<i64: 16, 96>}, {pipeline_mode = #tpu.pipeline_mode<synchronous>, transform_indices = @transform_1, window_bounds = array<i64: 96, 96>}, {pipeline_mode = #tpu.pipeline_mode<synchronous>, transform_indices = @transform_2, window_bounds = array<i64: 1, 96>}, {pipeline_mode = #tpu.pipeline_mode<synchronous>, transform_indices = @transform_3, window_bounds = array<i64: 32, 32>}, {pipeline_mode = #tpu.pipeline_mode<synchronous>, transform_indices = @transform_4, window_bounds = array<i64: 1, 32>}, {transform_indices = @transform_5, window_bounds = array<i64: 16, 32>}, {transform_indices = @transform_6, window_bounds = array<i64: 2, 256>}]} {
    %c0 = arith.constant 0 : index
    %c0_0 = arith.constant 0 : index
    %0 = vector.load %arg1[%c0, %c0_0] : memref<16x96xf32, #tpu.memory_space<vmem>>, vector<16x96xf32>
    %c0_1 = arith.constant 0 : index
    %c0_2 = arith.constant 0 : index
    %1 = vector.load %arg2[%c0_1, %c0_2] : memref<96x96xf32, #tpu.memory_space<vmem>>, vector<96x96xf32>
    %cst = arith.constant dense<0.000000e+00> : vector<16x96xf32>
    %2 = tpu.matmul %0, %1, %cst {dimension_numbers = #tpu.dot_dimension_numbers<[1], [0], [0], [1], [0, 0, 1, 1], [], []>} : vector<16x96xf32>, vector<96x96xf32>, vector<16x96xf32> -> vector<16x96xf32>
    %c0_3 = arith.constant 0 : index
    %c0_4 = arith.constant 0 : index
    %3 = vector.load %arg3[%c0_3, %c0_4] : memref<1x96xf32, #tpu.memory_space<vmem>>, vector<1x96xf32>
    %4 = vector.broadcast %3 : vector<1x96xf32> to vector<16x96xf32>
    %5 = arith.addf %2, %4 : vector<16x96xf32>
    %6 = vector.shape_cast %5 : vector<16x96xf32> to vector<2x8x96xf32>
    %7 = vector.extract_strided_slice %6 {offsets = [0, 0, 0], sizes = [2, 8, 32], strides = [1, 1, 1]} : vector<2x8x96xf32> to vector<2x8x32xf32>
    %8 = vector.extract_strided_slice %6 {offsets = [0, 0, 32], sizes = [2, 8, 32], strides = [1, 1, 1]} : vector<2x8x96xf32> to vector<2x8x32xf32>
    %9 = vector.extract_strided_slice %6 {offsets = [0, 0, 64], sizes = [2, 8, 32], strides = [1, 1, 1]} : vector<2x8x96xf32> to vector<2x8x32xf32>
    %10 = vector.extract_strided_slice %7 {offsets = [0, 0, 0], sizes = [2, 8, 8], strides = [1, 1, 1]} : vector<2x8x32xf32> to vector<2x8x8xf32>
    %11 = vector.extract_strided_slice %8 {offsets = [0, 0, 0], sizes = [2, 8, 8], strides = [1, 1, 1]} : vector<2x8x32xf32> to vector<2x8x8xf32>
    %12 = vector.extract_strided_slice %9 {offsets = [0, 0, 0], sizes = [2, 8, 8], strides = [1, 1, 1]} : vector<2x8x32xf32> to vector<2x8x8xf32>
    "tpu.trace_start"() <{level = 10 : i32, message = "bqd,bkd->bqk"}> : () -> ()
    %cst_5 = arith.constant dense<0.000000e+00> : vector<2x8x8xf32>
    %13 = tpu.matmul %10, %11, %cst_5 {dimension_numbers = #tpu.dot_dimension_numbers<[2], [2], [1], [1], [0, 0, 0, 1, 1, 1], [0], [0]>} : vector<2x8x8xf32>, vector<2x8x8xf32>, vector<2x8x8xf32> -> vector<2x8x8xf32>
    "tpu.trace_stop"() : () -> ()
    %cst_6 = arith.constant dense<0xFF800000> : vector<2x8xf32>
    %14 = vector.multi_reduction <maximumf>, %13, %cst_6 [2] : vector<2x8x8xf32> to vector<2x8xf32>
    %15 = vector.shape_cast %14 : vector<2x8xf32> to vector<2x8x1xf32>
    %16 = vector.broadcast %15 : vector<2x8x1xf32> to vector<2x8x8xf32>
    %17 = arith.subf %13, %16 : vector<2x8x8xf32>
    %18 = math.exp %17 : vector<2x8x8xf32>
    %cst_7 = arith.constant dense<0.000000e+00> : vector<2x8xf32>
    %19 = vector.multi_reduction <add>, %18, %cst_7 [2] : vector<2x8x8xf32> to vector<2x8xf32>
    %20 = vector.shape_cast %19 : vector<2x8xf32> to vector<2x8x1xf32>
    %21 = tpu.reciprocal %20 {approx = true} : vector<2x8x1xf32> -> vector<2x8x1xf32>
    %22 = vector.broadcast %21 : vector<2x8x1xf32> to vector<2x8x8xf32>
    %23 = arith.mulf %18, %22 : vector<2x8x8xf32>
    %24 = vector.shape_cast %23 : vector<2x8x8xf32> to vector<2x64xf32>
    "tpu.trace_start"() <{level = 10 : i32, message = "bqk,bkd->bqd"}> : () -> ()
    %cst_8 = arith.constant dense<0.000000e+00> : vector<2x8x8xf32>
    %25 = tpu.matmul %23, %12, %cst_8 {dimension_numbers = #tpu.dot_dimension_numbers<[2], [1], [1], [2], [0, 0, 0, 1, 1, 2], [0], [0]>} : vector<2x8x8xf32>, vector<2x8x8xf32>, vector<2x8x8xf32> -> vector<2x8x8xf32>
    "tpu.trace_stop"() : () -> ()
    %26 = vector.shape_cast %25 : vector<2x8x8xf32> to vector<16x8xf32>
    %c0_9 = arith.constant 0 : index
    %c0_10 = arith.constant 0 : index
    %27 = vector.load %arg8[%c0_9, %c0_10] : memref<16x32xf32, #tpu.memory_space<vmem>>, vector<16x8xf32>
    tpu.vector_store %arg8[%c0_9, %c0_10], %26 {strides = array<i32>} : memref<16x32xf32, #tpu.memory_space<vmem>>, vector<16x8xf32>,
    %28 = vector.extract_strided_slice %7 {offsets = [0, 0, 8], sizes = [2, 8, 8], strides = [1, 1, 1]} : vector<2x8x32xf32> to vector<2x8x8xf32>
    %29 = vector.extract_strided_slice %8 {offsets = [0, 0, 8], sizes = [2, 8, 8], strides = [1, 1, 1]} : vector<2x8x32xf32> to vector<2x8x8xf32>
    %30 = vector.extract_strided_slice %9 {offsets = [0, 0, 8], sizes = [2, 8, 8], strides = [1, 1, 1]} : vector<2x8x32xf32> to vector<2x8x8xf32>
    "tpu.trace_start"() <{level = 10 : i32, message = "bqd,bkd->bqk"}> : () -> ()
    %cst_11 = arith.constant dense<0.000000e+00> : vector<2x8x8xf32>
    %31 = tpu.matmul %28, %29, %cst_11 {dimension_numbers = #tpu.dot_dimension_numbers<[2], [2], [1], [1], [0, 0, 0, 1, 1, 1], [0], [0]>} : vector<2x8x8xf32>, vector<2x8x8xf32>, vector<2x8x8xf32> -> vector<2x8x8xf32>
    "tpu.trace_stop"() : () -> ()
    %cst_12 = arith.constant dense<0xFF800000> : vector<2x8xf32>
    %32 = vector.multi_reduction <maximumf>, %31, %cst_12 [2] : vector<2x8x8xf32> to vector<2x8xf32>
    %33 = vector.shape_cast %32 : vector<2x8xf32> to vector<2x8x1xf32>
    %34 = vector.broadcast %33 : vector<2x8x1xf32> to vector<2x8x8xf32>
    %35 = arith.subf %31, %34 : vector<2x8x8xf32>
    %36 = math.exp %35 : vector<2x8x8xf32>
    %cst_13 = arith.constant dense<0.000000e+00> : vector<2x8xf32>
    %37 = vector.multi_reduction <add>, %36, %cst_13 [2] : vector<2x8x8xf32> to vector<2x8xf32>
    %38 = vector.shape_cast %37 : vector<2x8xf32> to vector<2x8x1xf32>
    %39 = tpu.reciprocal %38 {approx = true} : vector<2x8x1xf32> -> vector<2x8x1xf32>
    %40 = vector.broadcast %39 : vector<2x8x1xf32> to vector<2x8x8xf32>
    %41 = arith.mulf %36, %40 : vector<2x8x8xf32>
    %42 = vector.shape_cast %41 : vector<2x8x8xf32> to vector<2x64xf32>
    "tpu.trace_start"() <{level = 10 : i32, message = "bqk,bkd->bqd"}> : () -> ()
    %cst_14 = arith.constant dense<0.000000e+00> : vector<2x8x8xf32>
    %43 = tpu.matmul %41, %30, %cst_14 {dimension_numbers = #tpu.dot_dimension_numbers<[2], [1], [1], [2], [0, 0, 0, 1, 1, 2], [0], [0]>} : vector<2x8x8xf32>, vector<2x8x8xf32>, vector<2x8x8xf32> -> vector<2x8x8xf32>
    "tpu.trace_stop"() : () -> ()
    %44 = vector.shape_cast %43 : vector<2x8x8xf32> to vector<16x8xf32>
    %c0_15 = arith.constant 0 : index
    %c8 = arith.constant 8 : index
    %45 = vector.load %arg8[%c0_15, %c8] : memref<16x32xf32, #tpu.memory_space<vmem>>, vector<16x8xf32>
    tpu.vector_store %arg8[%c0_15, %c8], %44 {strides = array<i32>} : memref<16x32xf32, #tpu.memory_space<vmem>>, vector<16x8xf32>,
    %46 = vector.extract_strided_slice %7 {offsets = [0, 0, 16], sizes = [2, 8, 8], strides = [1, 1, 1]} : vector<2x8x32xf32> to vector<2x8x8xf32>
    %47 = vector.extract_strided_slice %8 {offsets = [0, 0, 16], sizes = [2, 8, 8], strides = [1, 1, 1]} : vector<2x8x32xf32> to vector<2x8x8xf32>
    %48 = vector.extract_strided_slice %9 {offsets = [0, 0, 16], sizes = [2, 8, 8], strides = [1, 1, 1]} : vector<2x8x32xf32> to vector<2x8x8xf32>
    "tpu.trace_start"() <{level = 10 : i32, message = "bqd,bkd->bqk"}> : () -> ()
    %cst_16 = arith.constant dense<0.000000e+00> : vector<2x8x8xf32>
    %49 = tpu.matmul %46, %47, %cst_16 {dimension_numbers = #tpu.dot_dimension_numbers<[2], [2], [1], [1], [0, 0, 0, 1, 1, 1], [0], [0]>} : vector<2x8x8xf32>, vector<2x8x8xf32>, vector<2x8x8xf32> -> vector<2x8x8xf32>
    "tpu.trace_stop"() : () -> ()
    %cst_17 = arith.constant dense<0xFF800000> : vector<2x8xf32>
    %50 = vector.multi_reduction <maximumf>, %49, %cst_17 [2] : vector<2x8x8xf32> to vector<2x8xf32>
    %51 = vector.shape_cast %50 : vector<2x8xf32> to vector<2x8x1xf32>
    %52 = vector.broadcast %51 : vector<2x8x1xf32> to vector<2x8x8xf32>
    %53 = arith.subf %49, %52 : vector<2x8x8xf32>
    %54 = math.exp %53 : vector<2x8x8xf32>
    %cst_18 = arith.constant dense<0.000000e+00> : vector<2x8xf32>
    %55 = vector.multi_reduction <add>, %54, %cst_18 [2] : vector<2x8x8xf32> to vector<2x8xf32>
    %56 = vector.shape_cast %55 : vector<2x8xf32> to vector<2x8x1xf32>
    %57 = tpu.reciprocal %56 {approx = true} : vector<2x8x1xf32> -> vector<2x8x1xf32>
    %58 = vector.broadcast %57 : vector<2x8x1xf32> to vector<2x8x8xf32>
    %59 = arith.mulf %54, %58 : vector<2x8x8xf32>
    %60 = vector.shape_cast %59 : vector<2x8x8xf32> to vector<2x64xf32>
    "tpu.trace_start"() <{level = 10 : i32, message = "bqk,bkd->bqd"}> : () -> ()
    %cst_19 = arith.constant dense<0.000000e+00> : vector<2x8x8xf32>
    %61 = tpu.matmul %59, %48, %cst_19 {dimension_numbers = #tpu.dot_dimension_numbers<[2], [1], [1], [2], [0, 0, 0, 1, 1, 2], [0], [0]>} : vector<2x8x8xf32>, vector<2x8x8xf32>, vector<2x8x8xf32> -> vector<2x8x8xf32>
    "tpu.trace_stop"() : () -> ()
    %62 = vector.shape_cast %61 : vector<2x8x8xf32> to vector<16x8xf32>
    %c0_20 = arith.constant 0 : index
    %c16 = arith.constant 16 : index
    %63 = vector.load %arg8[%c0_20, %c16] : memref<16x32xf32, #tpu.memory_space<vmem>>, vector<16x8xf32>
    tpu.vector_store %arg8[%c0_20, %c16], %62 {strides = array<i32>} : memref<16x32xf32, #tpu.memory_space<vmem>>, vector<16x8xf32>,
    %64 = vector.extract_strided_slice %7 {offsets = [0, 0, 24], sizes = [2, 8, 8], strides = [1, 1, 1]} : vector<2x8x32xf32> to vector<2x8x8xf32>
    %65 = vector.extract_strided_slice %8 {offsets = [0, 0, 24], sizes = [2, 8, 8], strides = [1, 1, 1]} : vector<2x8x32xf32> to vector<2x8x8xf32>
    %66 = vector.extract_strided_slice %9 {offsets = [0, 0, 24], sizes = [2, 8, 8], strides = [1, 1, 1]} : vector<2x8x32xf32> to vector<2x8x8xf32>
    "tpu.trace_start"() <{level = 10 : i32, message = "bqd,bkd->bqk"}> : () -> ()
    %cst_21 = arith.constant dense<0.000000e+00> : vector<2x8x8xf32>
    %67 = tpu.matmul %64, %65, %cst_21 {dimension_numbers = #tpu.dot_dimension_numbers<[2], [2], [1], [1], [0, 0, 0, 1, 1, 1], [0], [0]>} : vector<2x8x8xf32>, vector<2x8x8xf32>, vector<2x8x8xf32> -> vector<2x8x8xf32>
    "tpu.trace_stop"() : () -> ()
    %cst_22 = arith.constant dense<0xFF800000> : vector<2x8xf32>
    %68 = vector.multi_reduction <maximumf>, %67, %cst_22 [2] : vector<2x8x8xf32> to vector<2x8xf32>
    %69 = vector.shape_cast %68 : vector<2x8xf32> to vector<2x8x1xf32>
    %70 = vector.broadcast %69 : vector<2x8x1xf32> to vector<2x8x8xf32>
    %71 = arith.subf %67, %70 : vector<2x8x8xf32>
    %72 = math.exp %71 : vector<2x8x8xf32>
    %cst_23 = arith.constant dense<0.000000e+00> : vector<2x8xf32>
    %73 = vector.multi_reduction <add>, %72, %cst_23 [2] : vector<2x8x8xf32> to vector<2x8xf32>
    %74 = vector.shape_cast %73 : vector<2x8xf32> to vector<2x8x1xf32>
    %75 = tpu.reciprocal %74 {approx = true} : vector<2x8x1xf32> -> vector<2x8x1xf32>
    %76 = vector.broadcast %75 : vector<2x8x1xf32> to vector<2x8x8xf32>
    %77 = arith.mulf %72, %76 : vector<2x8x8xf32>
    %78 = vector.shape_cast %77 : vector<2x8x8xf32> to vector<2x64xf32>
    "tpu.trace_start"() <{level = 10 : i32, message = "bqk,bkd->bqd"}> : () -> ()
    %cst_24 = arith.constant dense<0.000000e+00> : vector<2x8x8xf32>
    %79 = tpu.matmul %77, %66, %cst_24 {dimension_numbers = #tpu.dot_dimension_numbers<[2], [1], [1], [2], [0, 0, 0, 1, 1, 2], [0], [0]>} : vector<2x8x8xf32>, vector<2x8x8xf32>, vector<2x8x8xf32> -> vector<2x8x8xf32>
    "tpu.trace_stop"() : () -> ()
    %80 = vector.shape_cast %79 : vector<2x8x8xf32> to vector<16x8xf32>
    %c0_25 = arith.constant 0 : index
    %c24 = arith.constant 24 : index
    %81 = vector.load %arg8[%c0_25, %c24] : memref<16x32xf32, #tpu.memory_space<vmem>>, vector<16x8xf32>
    tpu.vector_store %arg8[%c0_25, %c24], %80 {strides = array<i32>} : memref<16x32xf32, #tpu.memory_space<vmem>>, vector<16x8xf32>,
    %82 = tpu.concatenate %24, %42, %60, %78 in 1 : vector<2x64xf32>, vector<2x64xf32>, vector<2x64xf32>, vector<2x64xf32> -> vector<2x256xf32>
    %c0_26 = arith.constant 0 : index
    %c0_27 = arith.constant 0 : index
    %83 = vector.load %arg7[%c0_26, %c0_27] : memref<2x256xf32, #tpu.memory_space<vmem>>, vector<2x256xf32>
    tpu.vector_store %arg7[%c0_26, %c0_27], %82 {strides = array<i32>} : memref<2x256xf32, #tpu.memory_space<vmem>>, vector<2x256xf32>,
    %c0_28 = arith.constant 0 : index
    %c0_29 = arith.constant 0 : index
    %84 = vector.load %arg8[%c0_28, %c0_29] : memref<16x32xf32, #tpu.memory_space<vmem>>, vector<16x32xf32>
    %c0_30 = arith.constant 0 : index
    %c0_31 = arith.constant 0 : index
    %85 = vector.load %arg4[%c0_30, %c0_31] : memref<32x32xf32, #tpu.memory_space<vmem>>, vector<32x32xf32>
    %cst_32 = arith.constant dense<0.000000e+00> : vector<16x32xf32>
    %86 = tpu.matmul %84, %85, %cst_32 {dimension_numbers = #tpu.dot_dimension_numbers<[1], [0], [0], [1], [0, 0, 1, 1], [], []>} : vector<16x32xf32>, vector<32x32xf32>, vector<16x32xf32> -> vector<16x32xf32>
    %c0_33 = arith.constant 0 : index
    %c0_34 = arith.constant 0 : index
    %87 = vector.load %arg5[%c0_33, %c0_34] : memref<1x32xf32, #tpu.memory_space<vmem>>, vector<1x32xf32>
    %88 = vector.broadcast %87 : vector<1x32xf32> to vector<16x32xf32>
    %89 = arith.addf %86, %88 : vector<16x32xf32>
    %c0_35 = arith.constant 0 : index
    %c0_36 = arith.constant 0 : index
    %90 = vector.load %arg6[%c0_35, %c0_36] : memref<16x32xf32, #tpu.memory_space<vmem>>, vector<16x32xf32>
    tpu.vector_store %arg6[%c0_35, %c0_36], %89 {strides = array<i32>} : memref<16x32xf32, #tpu.memory_space<vmem>>, vector<16x32xf32>,
    return
  }
  func.func @transform_0(%arg0: i32) -> (i32, i32) {
    %c0_i32 = arith.constant 0 : i32
    %c0_i32_0 = arith.constant 0 : i32
    return %arg0, %c0_i32 : i32, i32
  }
  func.func @transform_1(%arg0: i32) -> (i32, i32) {
    %c0_i32 = arith.constant 0 : i32
    %c0_i32_0 = arith.constant 0 : i32
    %c0_i32_1 = arith.constant 0 : i32
    return %c0_i32, %c0_i32_0 : i32, i32
  }
  func.func @transform_2(%arg0: i32) -> (i32, i32) {
    %c0_i32 = arith.constant 0 : i32
    %c0_i32_0 = arith.constant 0 : i32
    %c0_i32_1 = arith.constant 0 : i32
    return %c0_i32, %c0_i32_0 : i32, i32
  }
  func.func @transform_3(%arg0: i32) -> (i32, i32) {
    %c0_i32 = arith.constant 0 : i32
    %c0_i32_0 = arith.constant 0 : i32
    %c0_i32_1 = arith.constant 0 : i32
    return %c0_i32, %c0_i32_0 : i32, i32
  }
  func.func @transform_4(%arg0: i32) -> (i32, i32) {
    %c0_i32 = arith.constant 0 : i32
    %c0_i32_0 = arith.constant 0 : i32
    %c0_i32_1 = arith.constant 0 : i32
    return %c0_i32, %c0_i32_0 : i32, i32
  }
  func.func @transform_5(%arg0: i32) -> (i32, i32) {
    %c0_i32 = arith.constant 0 : i32
    %c0_i32_0 = arith.constant 0 : i32
    return %arg0, %c0_i32 : i32, i32
  }
  func.func @transform_6(%arg0: i32) -> (i32, i32) {
    %c0_i32 = arith.constant 0 : i32
    %c0_i32_0 = arith.constant 0 : i32
    return %arg0, %c0_i32 : i32, i32
  }
}

</mosaic_0001>

<bundles_post_ra>
// kernel: tpu_custom_call.1
= control target key start
LH: loop header
LB: loop body
LE: loop exit
PB: predicated region body
PF: predicated region fallthrough
CT: control target
= control target key end

     0   :  { %12 = vsyncpa [#allocation4], 0  ;;  %s2910_s0 = inlined_call_operand.hbm [shape: f32[16,96], index: 0, kind: input, shape index: {}]   ;;  %s2911_s1 = inlined_call_operand.hbm [shape: f32[96,96], index: 1, kind: input, shape index: {}]   ;;  %s2912_s2 = inlined_call_operand.vmem [shape: f32[1,96], index: 2, kind: input, shape index: {}]   ;;  %s2913_s3 = inlined_call_operand.hbm [shape: f32[32,32], index: 3, kind: input, shape index: {}]   ;;  %s2914_s4 = inlined_call_operand.vmem [shape: f32[1,32], index: 4, kind: input, shape index: {}]   ;;  %s2915_s5 = inlined_call_operand.hbm [shape: f32[16,32], index: 5, kind: output, shape index: {0}]   ;;  %s2916_s6 = inlined_call_operand.hbm [shape: f32[2,256], index: 6, kind: output, shape index: {1}]  }
   0x1   :  { %13 = vsyncpa [#allocation7], 0 }
   0x2   :  { %14 = vsyncpa [#allocation5], 0 }
   0x3   :  { %15 = vsyncpa [#allocation11], 0  ;;  %s2449_s21 = smov [#allocation6]   ;;  %s2450_s23 = smov [#allocation3]  }
   0x4   :  { %s33_s22 = sshll.u32 %s2449_s21, 4  ;;  %s21_s24 = sshll.u32 %s2450_s23, 4  ;;  %s34_s22 = int_to_ptr.vmem [resolvable:$true] %s33_s22  ;;  %s22_s24 = int_to_ptr.vmem [resolvable:$true] %s21_s24 }
   0x5   :  { %s2349_s25 = scalar_lea.vmem %s34_s22, 1536  ;;  %p2354_p1 = scmp.lt.s32.totalorder %s34_s22, %s34_s22 }
   0x6   :  { %p2350_p0 = scmp.ne.s32.totalorder %s34_s22, %s2349_s25  ;;  %p2355_p2 = scmp.lt.s32.totalorder %s2349_s25, %s2349_s25 }
   0x8   :  { %p2356_p3 = por %p2355_p2, %p2354_p1 }
   0xa   :  { %p2357_p4 = pnand %p2356_p3, %p2350_p0 }
   0xc   :  { %2360 = shalt.err (!%p2357_p4)
}
   0xd   :  { %s2451_s26 = smov 128   ;;  %s2452_s27 = smov 8  }
   0xe   :  { %39 = dma.hbm_to_vmem [thread:$0]  %s2911_s1, 1536, %s34_s22, [#allocation7], %s2451_s26, %s2451_s26, %s2452_s27  }
   0xf   :  { %s2369_s30 = scalar_lea.vmem %s22_s24, 256  ;;  %p2374_p6 = scmp.lt.s32.totalorder %s22_s24, %s22_s24 }
  0x10   :  { %p2370_p5 = scmp.ne.s32.totalorder %s22_s24, %s2369_s30  ;;  %p2375_p7 = scmp.lt.s32.totalorder %s2369_s30, %s2369_s30 }
  0x12   :  { %p2376_p8 = por %p2375_p7, %p2374_p6 }
  0x14   :  { %p2377_p9 = pnand %p2376_p8, %p2370_p5 }
  0x16   :  { %2380 = shalt.err (!%p2377_p9)
}
  0x17   :  { %27 = dma.hbm_to_vmem [thread:$0]  %s2910_s0, 256, %s22_s24, [#allocation4], %s2451_s26, %s2451_s26, %s2452_s27  }
  0x18   :  { %s2453_s9 = smov [#allocation8]  }
  0x19   :  { %s47_s10 = sshll.u32 %s2453_s9, 4  ;;  %s48_s10 = int_to_ptr.vmem [resolvable:$true] %s47_s10 }
  0x1a   :  { %s2389_s11 = scalar_lea.vmem %s48_s10, 512  ;;  %p2394_p11 = scmp.lt.s32.totalorder %s48_s10, %s48_s10 }
  0x1b   :  { %p2390_p10 = scmp.ne.s32.totalorder %s48_s10, %s2389_s11  ;;  %p2395_p12 = scmp.lt.s32.totalorder %s2389_s11, %s2389_s11 }
  0x1d   :  { %p2396_p13 = por %p2395_p12, %p2394_p11 }
  0x1f   :  { %p2397_p0 = pnand %p2396_p13, %p2390_p10 }
  0x21   :  { %2400 = shalt.err (!%p2397_p0)
}
  0x22   :  { %53 = dma.hbm_to_vmem [thread:$0]  %s2913_s3, 512, %s48_s10, [#allocation7], %s2451_s26, %s2451_s26, %s2452_s27  }
  0x23   :  { %2441 = dma.done.wait [#allocation4], 256  }
  0x24   :  { %2442 = vsyncadd [#allocation4], 4294967040 }
  0x25   :  { %2443 = dma.done.wait [#allocation7], 2048  }
  0x26   :  { %2444 = vsyncadd [#allocation7], 4294965248  ;;  %v78_v0 = vld [vmem:[#allocation6 + $0x58] sm:$0xff]  ;;  %v77_v1 = vld [vmem:[#allocation6 + $0x50] sm:$0xff]  ;;  %vm86_vm0 = vcmask 785408   ;;  %v2454_v14 = vmov 0.0   ;;  %v349_v46 = vlaneseq }
  0x27   :  { %2166 = vmatprep.subr.mxu0 %v78_v0  ;;  %v76_v2 = vld [vmem:[#allocation6 + $0x48] sm:$0xff]  ;;  %v75_v3 = vld [vmem:[#allocation6 + $0x40] sm:$0xff]  ;;  %v65_v4 = vld [vmem:[#allocation3] sm:$0xff]  ;;  %2193 = vmatprep.subr.mxu1 %v2454_v14  ;;  %vm2455_vm1 = vmmov 0   ;;  %s2456_s13 = smov 96   ;;  %vm171_vm2 = vcmask 64512  }
  0x28   :  { %2167 = vmatpush3.msra.mxu0 %v78_v0  ;;  %2190 = vmatprep.mubr.msk.f32.mxu0 %vm86_vm0, %v65_v4  ;;  %v74_v5 = vld [vmem:[#allocation6 + $0x38] sm:$0xff]  ;;  %v73_v6 = vld [vmem:[#allocation6 + $0x30] sm:$0xff]  ;;  %v72_v7 = vld [vmem:[#allocation6 + $0x28] sm:$0xff]  ;;  %s2458_s14 = smov 88   ;;  %s2459_s15 = smov 120   ;;  %v2569_v48 = vshrl.u32 %v349_v46, 7 }
  0x29   :  { %2168 = vmatprep.subr.mxu0 %v77_v1  ;;  %v71_v8 = vld [vmem:[#allocation6 + $0x20] sm:$0xff]  ;;  %v70_v9 = vld [vmem:[#allocation6 + $0x18] sm:$0xff]  ;;  %v69_v10 = vld [vmem:[#allocation6 + $0x10] sm:$0xff]  ;;  %2195 = vmatprep.mubr.msk.f32.mxu1 %vm2455_vm1, %v2454_v14  ;;  %v2460_v44 = vmov 1983009808   ;;  %s2461_s16 = smov 56  }
  0x2a   :  { %2169 = vmatpush3.msra.mxu0 %v77_v1  ;;  %v68_v11 = vld [vmem:[#allocation6 + $0x8] sm:$0xff]  ;;  %v67_v12 = vld [vmem:[#allocation6] sm:$0xff]  ;;  %v66_v13 = vld [vmem:[#allocation3 + $0x8] sm:$0xff]  ;;  %v347_v45 = vunpack.c.l.s4 %v2460_v44  ;;  %s2462_s17 = smov 80   ;;  %s2463_s18 = smov 112   ;;  %vm1045_vm3 = vcmask 130112  }
  0x2b   :  { %2170 = vmatprep.subr.mxu0 %v76_v2  ;;  %v2083_v16 = vld [vmem:[%s2912_s2] ss:$0 sm:$0xff]  ;;  %s2457_s2 = smov 64   ;;  %s2464_s19 = smov 48   ;;  %vm1487_vm4 = vcmask 195712   ;;  %vm1929_vm5 = vcmask 261312  }
  0x2c   :  { %2171 = vmatpush3.msra.mxu0 %v76_v2  ;;  %v348_v47 = vunpack.c.0.s8 %v347_v45  ;;  %s2465_s20 = smov 72   ;;  %s2466_s21 = smov 104   ;;  %vm444_vm6 = vcmask 261120   ;;  %vm440_vm7 = vcmask 130048   ;;  %vm442_vm8 = vcmask 195584  }
  0x2d   :  { %2172 = vmatprep.subr.mxu0 %v75_v3  ;;  %s2467_s22 = smov 40   ;;  %s2468_s23 = smov 16   ;;  %vm446_vm9 = vcmask 326656   ;;  %vm448_vm10 = vcmask 392192   ;;  %vm450_vm11 = vcmask 457728   ;;  %vm1940_vm12 = vcmask 523264  }
  0x2e   :  { %2173 = vmatpush3.msra.mxu0 %v75_v3  ;;  %v2573_v51 = vsub.s32 %v348_v47, %v2569_v48  ;;  %s2470_s24 = smov 24   ;;  %s2471_s25 = smov 32  }
  0x2f   :  { %2174 = vmatprep.subr.mxu0 %v74_v5  ;;  %s2472_s28 = smov [#allocation10]  }
  0x30   :  { %2175 = vmatpush3.msra.mxu0 %v74_v5  ;;  %s2069_s29 = sshll.u32 %s2472_s28, 4  ;;  %s2070_s29 = int_to_ptr.vmem [resolvable:$true] %s2069_s29 }
  0x31   :  { %2176 = vmatprep.subr.mxu0 %v73_v6  ;;  %s2401_s30 = scalar_lea.vmem %s2070_s29, 64  ;;  %p2406_p2 = scmp.lt.s32.totalorder %s2070_s29, %s2070_s29 }
  0x32   :  { %2177 = vmatpush3.msra.mxu0 %v73_v6  ;;  %p2402_p1 = scmp.ne.s32.totalorder %s2070_s29, %s2401_s30  ;;  %p2407_p3 = scmp.lt.s32.totalorder %s2401_s30, %s2401_s30 }
  0x33   :  { %2178 = vmatprep.subr.mxu0 %v72_v7 }
  0x34   :  { %2179 = vmatpush3.msra.mxu0 %v72_v7  ;;  %p2408_p4 = por %p2407_p3, %p2406_p2 }
  0x35   :  { %2180 = vmatprep.subr.mxu0 %v71_v8 }
  0x36   :  { %2181 = vmatpush3.msra.mxu0 %v71_v8  ;;  %p2409_p5 = pnand %p2408_p4, %p2402_p1 }
  0x37   :  { %2182 = vmatprep.subr.mxu0 %v70_v9 }
  0x38   :  { %2183 = vmatpush3.msra.mxu0 %v70_v9 }
  0x39   :  { %2184 = vmatprep.subr.mxu0 %v69_v10 }
  0x3a   :  { %2185 = vmatpush3.msra.mxu0 %v69_v10 }
  0x3b   :  { %2186 = vmatprep.subr.mxu0 %v68_v11 }
  0x3c   :  { %2187 = vmatpush3.msra.mxu0 %v68_v11 }
  0x3d   :  { %2188 = vmatprep.subr.mxu0 %v67_v12 }
  0x3e   :  { %2189 = vmatpush3.msra.mxu0 %v67_v12 }
  0x3f   :  { %2191 = vmatmul.mubr.msk.f32.vlgmr.msra.gmra.mxu0 %vm86_vm0, %v66_v13  ;;  %2233 = vmatprep.subr.mxu0 %v2454_v14 }
  0x40   :  { %2235 = vmatprep.mubr.msk.f32.mxu0 %vm2455_vm1, %v2454_v14 }
  0xff   :  { %v2192_v15 = vpop.f32.mrf.mxu0 }
 0x100   :  { %v2541_v19 = vadd.f32 %v2192_v15, %v2083_v16 }
 0x101   :  { %v159_v17 = vpop.f32.mrf.mxu0 }
 0x102   :  { %v2538_v18 = vadd.f32 %v2083_v16, %v159_v17 }
 0x104   :  { %169 = vrot.lane.b32.xlu0 %v2538_v18, %s2456_s13 }
 0x108   :  { %247 = vrot.lane.b32.xlu0 %v2541_v19, %s2456_s13 }
 0x176   :  { %v170_v20 = vpop.permute.xlu0 %169 }
 0x177   :  { %2194 = vmatpush3.xpose.msk.msra.mxu1 %vm171_vm2, %v170_v20 }
 0x178   :  { %2198 = vmatprep.subr.mxu1 %v2454_v14 }
 0x17a   :  { %2196 = vmatmul.mubr.msk.f32.vlgmr.msra.gmra.mxu1 %vm171_vm2, %v2538_v18  ;;  %v248_v21 = vpop.permute.xlu0 %247 }
 0x17b   :  { %2199 = vmatpush3.xpose.msk.msra.mxu1 %vm171_vm2, %v248_v21  ;;  %2200 = vmatprep.mubr.msk.f32.mxu1 %vm2455_vm1, %v2454_v14 }
 0x17c   :  { %2203 = vmatprep.subr.mxu1 %v2454_v14 }
 0x17e   :  { %2201 = vmatmul.mubr.msk.f32.vlgmr.msra.gmra.mxu1 %vm171_vm2, %v2541_v19 }
 0x17f   :  { %2205 = vmatprep.mubr.msk.f32.mxu1 %vm2455_vm1, %v2454_v14 }
 0x23a   :  { %v242_v22 = vpop.f32.mrf.mxu1 }
 0x23b   :  { %v323_v23 = vsel %vm171_vm2, %v242_v22, -inf }
 0x23c   :  { %324 = vmax.xlane.f32.xlu1 %v323_v23  ;;  %v2197_v24 = vpop.f32.mrf.mxu1 }
 0x23e   :  { %v319_v25 = vpop.f32.mrf.mxu1 }
 0x23f   :  { %v326_v26 = vsel %vm171_vm2, %v319_v25, -inf }
 0x240   :  { %327 = vmax.xlane.f32.xlu1 %v326_v26  ;;  %v2202_v27 = vpop.f32.mrf.mxu1 }
 0x251   :  { %452 = vrot.lane.b32.xlu1 %v2538_v18, %s2457_s2 }
 0x255   :  { %528 = vrot.lane.b32.xlu1 %v2541_v19, %s2457_s2 }
 0x259   :  { %608 = vrot.lane.b32.xlu1 %v2538_v18, %s2458_s14 }
 0x25d   :  { %606 = vrot.lane.b32.xlu1 %v2538_v18, %s2459_s15 }
 0x2c5   :  { %v325_v28 = vpop.xlane.xlu1 %324 }
 0x2c6   :  { %v329_v29 = vsub.f32 %v242_v22, %v325_v28 }
 0x2c8   :  { %v331_v30 = vmul.f32 1.442695, %v329_v29 }
 0x2c9   :  { %v328_v31 = vpop.xlane.xlu1 %327 }
 0x2ca   :  { %2309 = vpow2.f32 %v331_v30  ;;  %v330_v32 = vsub.f32 %v319_v25, %v328_v31 }
 0x2cc   :  { %v333_v33 = vmul.f32 1.442695, %v330_v32 }
 0x2cd   :  { %v453_v34 = vpop.permute.xlu1 %452 }
 0x2ce   :  { %2311 = vpow2.f32 %v333_v33  ;;  %2204 = vmatpush3.msra.mxu1 %v453_v34 }
 0x2cf   :  { %2208 = vmatprep.subr.mxu1 %v2454_v14 }
 0x2d1   :  { %v529_v39 = vpop.permute.xlu1 %528 }
 0x2d5   :  { %v609_v40 = vpop.permute.xlu1 %608 }
 0x2d7   :  { %v2310_v35 = vpop.eup %2309 }
 0x2d8   :  { %v335_v36 = vsel %vm171_vm2, %v2310_v35, 0.0 }
 0x2d9   :  { %336 = vadd.xlane.f32.xlu0 %v335_v36  ;;  %v607_v41 = vpop.permute.xlu1 %606 }
 0x2db   :  { %v2312_v37 = vpop.eup %2311 }
 0x2dc   :  { %v338_v38 = vsel %vm171_vm2, %v2312_v37, 0.0 }
 0x2dd   :  { %339 = vadd.xlane.f32.xlu1 %v338_v38 }
 0x2ee   :  { %684 = vrot.lane.b32.xlu1 %v2541_v19, %s2459_s15 }
 0x2ef   :  { %686 = vrot.lane.b32.xlu0 %v2541_v19, %s2458_s14 }
 0x362   :  { %v337_v42 = vpop.xlane.xlu0 %336 }
 0x363   :  { %2313 = vrcp.f32 %v337_v42 }
 0x366   :  { %v340_v43 = vpop.xlane.xlu1 %339  ;;  %v687_v62 = vpop.permute.xlu0 %686 }
 0x367   :  { %2315 = vrcp.f32 %v340_v43 }
 0x36a   :  { %v685_v1 = vpop.permute.xlu1 %684 }
 0x370   :  { %v2314_v49 = vpop.eup %2313 }
 0x371   :  { %v343_v50 = vmul.f32 %v2314_v49, %v2310_v35 }
 0x373   :  { %2206 = vmatmul.mubr.msk.f32.vlgmr.msra.gmra.mxu1 %vm171_vm2, %v343_v50  ;;  %v345_v54 = vcombine.high %v343_v50, %v2454_v14  ;;  %v2581_v55 = vrot.slane %v343_v50, %v2573_v51 }
 0x374   :  { %v2316_v52 = vpop.eup %2315  ;;  %2209 = vmatpush3.msra.mxu1 %v529_v39  ;;  %2210 = vmatprep.mubr.msk.f32.mxu1 %vm2455_vm1, %v2454_v14 }
 0x375   :  { %2213 = vmatprep.subr.mxu1 %v2454_v14  ;;  %v344_v53 = vmul.f32 %v2316_v52, %v2312_v37  ;;  %v2596_v60 = vrot.slane %v345_v54, %v2573_v51 }
 0x377   :  { %2211 = vmatmul.mubr.msk.f32.vlgmr.msra.gmra.mxu1 %vm171_vm2, %v344_v53  ;;  %v2584_v56 = vrot.slane %v344_v53, %v2573_v51  ;;  %v360_v57 = vcombine.high %v344_v53, %v2454_v14 }
 0x378   :  { %2214 = vmatpush3.xpose.msk.msra.mxu1 %vm171_vm2, %v609_v40  ;;  %2215 = vmatprep.mubr.msk.f32.mxu1 %vm2455_vm1, %v2454_v14 }
 0x379   :  { %2218 = vmatprep.subr.mxu1 %v2454_v14  ;;  %v375_v58 = vcombine.low %v2581_v55, %v2584_v56  ;;  %v376_v59 = vcombine.high %v2581_v55, %v2584_v56  ;;  %v2599_v61 = vrot.slane %v360_v57, %v2573_v51 }
 0x37b   :  { %2216 = vmatmul.mubr.msk.f32.vlgmr.msra.gmra.mxu1 %vm171_vm2, %v607_v41  ;;  %v391_v63 = vcombine.low %v2596_v60, %v2599_v61  ;;  %v392_v0 = vcombine.high %v2596_v60, %v2599_v61 }
 0x37c   :  { %2219 = vmatpush3.xpose.msk.msra.mxu1 %vm171_vm2, %v687_v62  ;;  %2220 = vmatprep.mubr.msk.f32.mxu1 %vm2455_vm1, %v2454_v14 }
 0x37d   :  { %2223 = vmatprep.subr.mxu1 %v2454_v14 }
 0x37f   :  { %2221 = vmatmul.mubr.msk.f32.vlgmr.msra.gmra.mxu1 %vm171_vm2, %v685_v1 }
 0x380   :  { %2225 = vmatprep.mubr.msk.f32.mxu1 %vm2455_vm1, %v2454_v14 }
 0x433   :  { %v524_v2 = vpop.f32.mrf.mxu1 }
 0x434   :  { %604 = vst.msk [vmem:[#allocation2] sm:$0xff] %vm171_vm2, %v524_v2 }
 0x435   :  { %v2207_v3 = vpop.f32.mrf.mxu1 }
 0x437   :  { %v600_v4 = vpop.f32.mrf.mxu1 }
 0x438   :  { %605 = vst.msk [vmem:[#allocation2 + $0x8] sm:$0xff] %vm171_vm2, %v600_v4 }
 0x439   :  { %v2212_v5 = vpop.f32.mrf.mxu1 }
 0x43b   :  { %v680_v6 = vpop.f32.mrf.mxu1 }
 0x43c   :  { %v762_v7 = vsel %vm171_vm2, %v680_v6, -inf }
 0x43d   :  { %763 = vmax.xlane.f32.xlu1 %v762_v7  ;;  %v2217_v8 = vpop.f32.mrf.mxu1 }
 0x43f   :  { %v758_v9 = vpop.f32.mrf.mxu1 }
 0x440   :  { %v765_v10 = vsel %vm171_vm2, %v758_v9, -inf }
 0x441   :  { %766 = vmax.xlane.f32.xlu0 %v765_v10  ;;  %v2222_v11 = vpop.f32.mrf.mxu1 }
 0x44e   :  { %885 = vrot.lane.b32.xlu1 %v2538_v18, %s2461_s16 }
 0x452   :  { %1050 = vrot.lane.b32.xlu1 %v2538_v18, %s2462_s17 }
 0x456   :  { %1128 = vrot.lane.b32.xlu1 %v2541_v19, %s2462_s17 }
 0x457   :  { %961 = vrot.lane.b32.xlu0 %v2541_v19, %s2461_s16 }
 0x45b   :  { %1048 = vrot.lane.b32.xlu0 %v2538_v18, %s2463_s18 }
 0x4c6   :  { %v764_v12 = vpop.xlane.xlu1 %763 }
 0x4c7   :  { %v768_v13 = vsub.f32 %v680_v6, %v764_v12 }
 0x4c9   :  { %v770_v15 = vmul.f32 1.442695, %v768_v13 }
 0x4ca   :  { %v886_v16 = vpop.permute.xlu1 %885  ;;  %v767_v17 = vpop.xlane.xlu0 %766 }
 0x4cb   :  { %2317 = vpow2.f32 %v770_v15  ;;  %v769_v20 = vsub.f32 %v758_v9, %v767_v17  ;;  %2224 = vmatpush3.msra.mxu1 %v886_v16 }
 0x4cc   :  { %2228 = vmatprep.subr.mxu1 %v2454_v14 }
 0x4cd   :  { %v772_v21 = vmul.f32 1.442695, %v769_v20 }
 0x4ce   :  { %v1051_v22 = vpop.permute.xlu1 %1050  ;;  %v962_v23 = vpop.permute.xlu0 %961 }
 0x4cf   :  { %2319 = vpow2.f32 %v772_v21  ;;  %2234 = vmatpush3.xpose.msk.msra.mxu0 %vm171_vm2, %v1051_v22 }
 0x4d0   :  { %2243 = vmatprep.subr.mxu0 %v2454_v14 }
 0x4d2   :  { %v1049_v24 = vpop.permute.xlu0 %1048  ;;  %v1129_v29 = vpop.permute.xlu1 %1128 }
 0x4d3   :  { %2236 = vmatmul.mubr.msk.f32.vlgmr.msra.gmra.mxu0 %vm171_vm2, %v1049_v24 }
 0x4d4   :  { %2245 = vmatprep.mubr.msk.f32.mxu0 %vm2455_vm1, %v2454_v14 }
 0x4d8   :  { %v2318_v25 = vpop.eup %2317 }
 0x4d9   :  { %v774_v26 = vsel %vm171_vm2, %v2318_v25, 0.0 }
 0x4da   :  { %775 = vadd.xlane.f32.xlu1 %v774_v26 }
 0x4dc   :  { %v2320_v27 = vpop.eup %2319 }
 0x4dd   :  { %v777_v28 = vsel %vm171_vm2, %v2320_v27, 0.0 }
 0x4de   :  { %778 = vadd.xlane.f32.xlu1 %v777_v28 }
 0x4ef   :  { %1126 = vrot.lane.b32.xlu1 %v2541_v19, %s2463_s18 }
 0x563   :  { %v776_v30 = vpop.xlane.xlu1 %775 }
 0x564   :  { %2321 = vrcp.f32 %v776_v30 }
 0x567   :  { %v779_v31 = vpop.xlane.xlu1 %778 }
 0x568   :  { %2323 = vrcp.f32 %v779_v31 }
 0x56b   :  { %v1127_v44 = vpop.permute.xlu1 %1126 }
 0x571   :  { %v2322_v32 = vpop.eup %2321 }
 0x572   :  { %v782_v33 = vmul.f32 %v2322_v32, %v2318_v25 }
 0x574   :  { %2226 = vmatmul.mubr.msk.f32.vlgmr.msra.gmra.mxu1 %vm171_vm2, %v782_v33  ;;  %v784_v36 = vcombine.high %v782_v33, %v2454_v14  ;;  %v2640_v37 = vrot.slane %v782_v33, %v2573_v51 }
 0x575   :  { %v2324_v34 = vpop.eup %2323  ;;  %2229 = vmatpush3.msra.mxu1 %v962_v23  ;;  %2230 = vmatprep.mubr.msk.f32.mxu1 %vm2455_vm1, %v2454_v14 }
 0x576   :  { %2238 = vmatprep.subr.mxu1 %v2454_v14  ;;  %v783_v35 = vmul.f32 %v2324_v34, %v2320_v27  ;;  %v2655_v42 = vrot.slane %v784_v36, %v2573_v51 }
 0x578   :  { %2231 = vmatmul.mubr.msk.f32.vlgmr.msra.gmra.mxu1 %vm171_vm2, %v783_v35  ;;  %v2643_v38 = vrot.slane %v783_v35, %v2573_v51  ;;  %v799_v39 = vcombine.high %v783_v35, %v2454_v14 }
 0x579   :  { %2239 = vmatpush3.xpose.msk.msra.mxu1 %vm171_vm2, %v1129_v29  ;;  %2240 = vmatprep.mubr.msk.f32.mxu1 %vm2455_vm1, %v2454_v14 }
 0x57a   :  { %2248 = vmatprep.subr.mxu1 %v2454_v14  ;;  %v814_v40 = vcombine.low %v2640_v37, %v2643_v38  ;;  %v815_v41 = vcombine.high %v2640_v37, %v2643_v38  ;;  %v2658_v43 = vrot.slane %v799_v39, %v2573_v51 }
 0x57c   :  { %2241 = vmatmul.mubr.msk.f32.vlgmr.msra.gmra.mxu1 %vm171_vm2, %v1127_v44  ;;  %v830_v45 = vcombine.low %v2655_v42, %v2658_v43  ;;  %v831_v46 = vcombine.high %v2655_v42, %v2658_v43 }
 0x57d   :  { %2250 = vmatprep.mubr.msk.f32.mxu1 %vm2455_vm1, %v2454_v14 }
 0x593   :  { %v1122_v47 = vpop.f32.mrf.mxu0 }
 0x594   :  { %v1204_v49 = vsel %vm171_vm2, %v1122_v47, -inf }
 0x595   :  { %1205 = vmax.xlane.f32.xlu0 %v1204_v49  ;;  %v2237_v50 = vpop.f32.mrf.mxu0 }
 0x61e   :  { %v1206_v52 = vpop.xlane.xlu0 %1205 }
 0x61f   :  { %v1210_v53 = vsub.f32 %v1122_v47, %v1206_v52 }
 0x621   :  { %v1212_v54 = vmul.f32 1.442695, %v1210_v53 }
 0x623   :  { %2325 = vpow2.f32 %v1212_v54 }
 0x630   :  { %v2326_v57 = vpop.eup %2325 }
 0x631   :  { %v1216_v62 = vsel %vm171_vm2, %v2326_v57, 0.0 }
 0x632   :  { %1217 = vadd.xlane.f32.xlu0 %v1216_v62 }
 0x634   :  { %v2669_v1 = vpop.f32.mrf.mxu1 }
 0x636   :  { %v2227_v2 = vpop.f32.mrf.mxu1 }
 0x638   :  { %v2671_v3 = vpop.f32.mrf.mxu1 }
 0x63a   :  { %v2232_v4 = vpop.f32.mrf.mxu1 }
 0x63c   :  { %v1200_v5 = vpop.f32.mrf.mxu1 }
 0x63d   :  { %v1207_v6 = vsel %vm171_vm2, %v1200_v5, -inf }
 0x63e   :  { %1208 = vmax.xlane.f32.xlu1 %v1207_v6  ;;  %v2242_v7 = vpop.f32.mrf.mxu1 }
 0x648   :  { %1403 = vrot.lane.b32.xlu0 %v2541_v19, %s2464_s19 }
 0x64f   :  { %1327 = vrot.lane.b32.xlu1 %v2538_v18, %s2464_s19 }
 0x653   :  { %1492 = vrot.lane.b32.xlu1 %v2538_v18, %s2465_s20 }
 0x657   :  { %1570 = vrot.lane.b32.xlu1 %v2541_v19, %s2465_s20 }
 0x65b   :  { %1568 = vrot.lane.b32.xlu1 %v2541_v19, %s2466_s21 }
 0x6bb   :  { %v1218_v8 = vpop.xlane.xlu0 %1217 }
 0x6bc   :  { %2327 = vrcp.f32 %v1218_v8 }
 0x6bf   :  { %v1404_v9 = vpop.permute.xlu0 %1403 }
 0x6c0   :  { %2249 = vmatpush3.msra.mxu1 %v1404_v9 }
 0x6c1   :  { %2258 = vmatprep.subr.mxu1 %v2454_v14 }
 0x6c7   :  { %v1209_v10 = vpop.xlane.xlu1 %1208 }
 0x6c8   :  { %v1211_v11 = vsub.f32 %v1200_v5, %v1209_v10 }
 0x6c9   :  { %v2328_v12 = vpop.eup %2327 }
 0x6ca   :  { %v1214_v13 = vmul.f32 1.442695, %v1211_v11  ;;  %v1224_v15 = vmul.f32 %v2328_v12, %v2326_v57 }
 0x6cb   :  { %v1328_v16 = vpop.permute.xlu1 %1327 }
 0x6cc   :  { %2329 = vpow2.f32 %v1214_v13  ;;  %2244 = vmatpush3.msra.mxu0 %v1328_v16  ;;  %v1226_v27 = vcombine.high %v1224_v15, %v2454_v14  ;;  %v2696_v28 = vrot.slane %v1224_v15, %v2573_v51 }
 0x6cd   :  { %2246 = vmatmul.mubr.msk.f32.vlgmr.msra.gmra.mxu0 %vm171_vm2, %v1224_v15  ;;  %2253 = vmatprep.subr.mxu0 %v2454_v14 }
 0x6ce   :  { %2255 = vmatprep.mubr.msk.f32.mxu0 %vm2455_vm1, %v2454_v14  ;;  %v2711_v33 = vrot.slane %v1226_v27, %v2573_v51 }
 0x6cf   :  { %v1493_v17 = vpop.permute.xlu1 %1492 }
 0x6d0   :  { %2254 = vmatpush3.xpose.msk.msra.mxu0 %vm171_vm2, %v1493_v17 }
 0x6d1   :  { %2263 = vmatprep.subr.mxu0 %v2454_v14 }
 0x6d3   :  { %v1571_v25 = vpop.permute.xlu1 %1570 }
 0x6d7   :  { %v1569_v35 = vpop.permute.xlu1 %1568 }
 0x6d9   :  { %v2330_v20 = vpop.eup %2329 }
 0x6da   :  { %v1219_v21 = vsel %vm171_vm2, %v2330_v20, 0.0 }
 0x6db   :  { %1220 = vadd.xlane.f32.xlu0 %v1219_v21 }
 0x6f1   :  { %1490 = vrot.lane.b32.xlu0 %v2538_v18, %s2466_s21 }
 0x764   :  { %v1221_v22 = vpop.xlane.xlu0 %1220 }
 0x765   :  { %2331 = vrcp.f32 %v1221_v22 }
 0x768   :  { %v1491_v23 = vpop.permute.xlu0 %1490 }
 0x769   :  { %2256 = vmatmul.mubr.msk.f32.vlgmr.msra.gmra.mxu0 %vm171_vm2, %v1491_v23 }
 0x76a   :  { %2265 = vmatprep.mubr.msk.f32.mxu0 %vm2455_vm1, %v2454_v14 }
 0x772   :  { %v2332_v24 = vpop.eup %2331 }
 0x773   :  { %v1225_v26 = vmul.f32 %v2332_v24, %v2330_v20 }
 0x775   :  { %2251 = vmatmul.mubr.msk.f32.vlgmr.msra.gmra.mxu1 %vm171_vm2, %v1225_v26  ;;  %v2699_v29 = vrot.slane %v1225_v26, %v2573_v51  ;;  %v1241_v30 = vcombine.high %v1225_v26, %v2454_v14 }
 0x776   :  { %2259 = vmatpush3.xpose.msk.msra.mxu1 %vm171_vm2, %v1571_v25  ;;  %2260 = vmatprep.mubr.msk.f32.mxu1 %vm2455_vm1, %v2454_v14 }
 0x777   :  { %2268 = vmatprep.subr.mxu1 %v2454_v14  ;;  %v1256_v31 = vcombine.low %v2696_v28, %v2699_v29  ;;  %v1257_v32 = vcombine.high %v2696_v28, %v2699_v29  ;;  %v2714_v34 = vrot.slane %v1241_v30, %v2573_v51 }
 0x779   :  { %2261 = vmatmul.mubr.msk.f32.vlgmr.msra.gmra.mxu1 %vm171_vm2, %v1569_v35  ;;  %v1272_v36 = vcombine.low %v2711_v33, %v2714_v34  ;;  %v1273_v39 = vcombine.high %v2711_v33, %v2714_v34 }
 0x77a   :  { %2270 = vmatprep.mubr.msk.f32.mxu1 %vm2455_vm1, %v2454_v14 }
 0x78d   :  { %v1399_v44 = vpop.f32.mrf.mxu0 }
 0x78f   :  { %v2247_v47 = vpop.f32.mrf.mxu0 }
 0x829   :  { %v1564_v49 = vpop.f32.mrf.mxu0 }
 0x82a   :  { %v1646_v50 = vsel %vm171_vm2, %v1564_v49, -inf }
 0x82b   :  { %1647 = vmax.xlane.f32.xlu0 %v1646_v50  ;;  %v2257_v52 = vpop.f32.mrf.mxu0 }
 0x835   :  { %v1475_v53 = vpop.f32.mrf.mxu1 }
 0x837   :  { %v2252_v54 = vpop.f32.mrf.mxu1 }
 0x839   :  { %v1642_v57 = vpop.f32.mrf.mxu1 }
 0x83a   :  { %v1649_v62 = vsel %vm171_vm2, %v1642_v57, -inf }
 0x83b   :  { %1650 = vmax.xlane.f32.xlu1 %v1649_v62  ;;  %v2262_v2 = vpop.f32.mrf.mxu1 }
 0x84c   :  { %1769 = vrot.lane.b32.xlu1 %v2538_v18, %s2467_s22 }
 0x850   :  { %1039 = vrot.lane.b32.xlu1 %v2669_v1, %s2452_s27 }
 0x854   :  { %1041 = vrot.lane.b32.xlu1 %v2671_v3, %s2452_s27 }
 0x858   :  { %1483 = vrot.lane.b32.xlu1 %v1475_v53, %s2468_s23  ;;  %v2469_v53 = vmov 1934713408  }
 0x859   :  { %v378_v54 = vunpack.c.l.s4 %v2469_v53 }
 0x8b4   :  { %v1648_v4 = vpop.xlane.xlu0 %1647 }
 0x8b5   :  { %v1652_v5 = vsub.f32 %v1564_v49, %v1648_v4 }
 0x8b7   :  { %v1654_v6 = vmul.f32 1.442695, %v1652_v5 }
 0x8b9   :  { %2333 = vpow2.f32 %v1654_v6  ;;  %v1960_v6 = vld [vmem:[#allocation8 + $0x18] sm:$0xff] }
 0x8c4   :  { %v1651_v7 = vpop.xlane.xlu1 %1650 }
 0x8c5   :  { %v1653_v8 = vsub.f32 %v1642_v57, %v1651_v7  ;;  %v379_v57 = vunpack.c.0.s8 %v378_v54  ;;  %v1959_v7 = vld [vmem:[#allocation8 + $0x10] sm:$0xff] }
 0x8c6   :  { %v2334_v9 = vpop.eup %2333 }
 0x8c7   :  { %v1656_v10 = vmul.f32 1.442695, %v1653_v8  ;;  %v1658_v11 = vsel %vm171_vm2, %v2334_v9, 0.0  ;;  %v2748_v62 = vsub.s32 %v379_v57, %v2569_v48  ;;  %v1957_v8 = vld [vmem:[#allocation8] sm:$0xff] }
 0x8c8   :  { %1659 = vadd.xlane.f32.xlu0 %v1658_v11  ;;  %v1770_v18 = vpop.permute.xlu1 %1769 }
 0x8c9   :  { %2335 = vpow2.f32 %v1656_v10  ;;  %2264 = vmatpush3.msra.mxu0 %v1770_v18  ;;  %v2754_v2 = vrot.slane %v814_v40, %v2748_v62  ;;  %v829_v48 = vrot.slane %v815_v41, %v2748_v62  ;;  %v1958_v40 = vld [vmem:[#allocation8 + $0x8] sm:$0xff]  ;;  %v838_v37 = vrot.slane %v830_v45, %v2748_v62 }
 0x8ca   :  { %2273 = vmatprep.subr.mxu0 %v1960_v6  ;;  %v845_v45 = vrot.slane %v831_v46, %v2748_v62  ;;  %v390_v46 = vrot.slane %v376_v59, %v2748_v62  ;;  %v399_v55 = vrot.slane %v391_v63, %v2748_v62  ;;  %v2823_v59 = vrot.slane %v1256_v31, %v2748_v62 }
 0x8cb   :  { %v848_v11 = vcombine.high %v838_v37, %v2454_v14  ;;  %v406_v63 = vrot.slane %v392_v0, %v2748_v62  ;;  %v1271_v31 = vrot.slane %v1257_v32, %v2748_v62  ;;  %v1280_v60 = vrot.slane %v1272_v36, %v2748_v62 }
 0x8cc   :  { %v1040_v1 = vpop.permute.xlu1 %1039  ;;  %v1287_v0 = vrot.slane %v1273_v39, %v2748_v62 }
 0x8cd   :  { %1046 = vst.msk [vmem:[#allocation2] sm:$0xff] %vm1045_vm3, %v1040_v1  ;;  %v1290_v61 = vcombine.high %v1280_v60, %v2454_v14 }
 0x8ce   :  { %v1291_v28 = vcombine.high %v1287_v0, %v2454_v14 }
 0x8d0   :  { %v1042_v3 = vpop.permute.xlu1 %1041 }
 0x8d1   :  { %1047 = vst.msk [vmem:[#allocation2 + $0x8] sm:$0xff] %vm1045_vm3, %v1042_v3  ;;  %v849_v3 = vcombine.high %v845_v45, %v2454_v14 }
 0x8d4   :  { %v1484_v12 = vpop.permute.xlu1 %1483 }
 0x8d5   :  { %1489 = vst.msk [vmem:[#allocation2 + $0x8] sm:$0xff] %vm1487_vm4, %v1484_v12 }
 0x8d6   :  { %v2336_v13 = vpop.eup %2335 }
 0x8d7   :  { %v1661_v15 = vsel %vm171_vm2, %v2336_v13, 0.0 }
 0x8d8   :  { %1662 = vadd.xlane.f32.xlu0 %v1661_v15  ;;  %v408_v15 = vcombine.high %v390_v46, %v2454_v14 }
 0x8ee   :  { %1845 = vrot.lane.b32.xlu0 %v2541_v19, %s2467_s22 }
 0x8f2   :  { %1481 = vrot.lane.b32.xlu0 %v1399_v44, %s2468_s23 }
 0x951   :  { %v1660_v16 = vpop.xlane.xlu0 %1659 }
 0x952   :  { %2337 = vrcp.f32 %v1660_v16 }
 0x95f   :  { %v2338_v17 = vpop.eup %2337 }
 0x960   :  { %v1666_v20 = vmul.f32 %v2338_v17, %v2334_v9  ;;  %v847_v9 = vcombine.high %v829_v48, %v2454_v14  ;;  %v409_v17 = vcombine.high %v399_v55, %v2454_v14 }
 0x961   :  { %v1663_v21 = vpop.xlane.xlu0 %1662 }
 0x962   :  { %2339 = vrcp.f32 %v1663_v21  ;;  %2266 = vmatmul.mubr.msk.f32.vlgmr.msra.gmra.mxu0 %vm171_vm2, %v1666_v20  ;;  %v1668_v26 = vcombine.high %v1666_v20, %v2454_v14  ;;  %v1675_v19 = vrot.slane %v1666_v20, %v2573_v51  ;;  %v1288_v20 = vcombine.high %v2823_v59, %v2454_v14 }
 0x963   :  { %2274 = vmatpush3.msra.mxu0 %v1960_v6  ;;  %v410_v21 = vcombine.high %v406_v63, %v2454_v14 }
 0x964   :  { %v1682_v47 = vrot.slane %v1668_v26, %v2573_v51  ;;  %2275 = vmatprep.subr.mxu0 %v1959_v7 }
 0x965   :  { %v1846_v22 = vpop.permute.xlu0 %1845  ;;  %2276 = vmatpush3.msra.mxu0 %v1959_v7 }
 0x966   :  { %2269 = vmatpush3.msra.mxu1 %v1846_v22  ;;  %2277 = vmatprep.subr.mxu0 %v1958_v40  ;;  %v1289_v22 = vcombine.high %v1271_v31, %v2454_v14 }
 0x967   :  { %2278 = vmatpush3.msra.mxu0 %v1958_v40 }
 0x968   :  { %2279 = vmatprep.subr.mxu0 %v1957_v8 }
 0x969   :  { %v1482_v23 = vpop.permute.xlu0 %1481  ;;  %2280 = vmatpush3.msra.mxu0 %v1957_v8 }
 0x96a   :  { %1488 = vst.msk [vmem:[#allocation2] sm:$0xff] %vm1487_vm4, %v1482_v23 }
 0x96f   :  { %v2340_v24 = vpop.eup %2339 }
 0x970   :  { %v1667_v25 = vmul.f32 %v2340_v24, %v2336_v13  ;;  %v2794_v13 = vrot.slane %v375_v58, %v2748_v62 }
 0x972   :  { %2271 = vmatmul.mubr.msk.f32.vlgmr.msra.gmra.mxu1 %vm171_vm2, %v1667_v25  ;;  %v1690_v27 = vrot.slane %v1667_v25, %v2573_v51  ;;  %v1683_v30 = vcombine.high %v1667_v25, %v2454_v14  ;;  %v407_v42 = vcombine.high %v2794_v13, %v2454_v14 }
 0x974   :  { %v1698_v35 = vcombine.low %v1675_v19, %v1690_v27  ;;  %v1699_v44 = vcombine.high %v1675_v19, %v1690_v27  ;;  %v1697_v49 = vrot.slane %v1683_v30, %v2573_v51  ;;  %v846_v51 = vcombine.high %v2754_v2, %v2454_v14 }
 0x976   :  { %v1714_v50 = vcombine.low %v1682_v47, %v1697_v49  ;;  %v1715_v52 = vcombine.high %v1682_v47, %v1697_v49  ;;  %v2772_v38 = vrot.slane %v1698_v35, %v2748_v62  ;;  %v1713_v1 = vrot.slane %v1699_v44, %v2748_v62 }
 0x978   :  { %v1730_v18 = vcombine.high %v2772_v38, %v2454_v14  ;;  %v1731_v12 = vcombine.high %v1713_v1, %v2454_v14  ;;  %v1722_v43 = vrot.slane %v1714_v50, %v2748_v62  ;;  %v1729_v16 = vrot.slane %v1715_v52, %v2748_v62 }
 0x97a   :  { %v1732_v58 = vcombine.high %v1722_v43, %v2454_v14  ;;  %v1733_v56 = vcombine.high %v1729_v16, %v2454_v14 }
 0xa22   :  { %v1841_v4 = vpop.f32.mrf.mxu0 }
 0xa23   :  { %1923 = vrot.lane.b32.xlu0 %v1841_v4, %s2470_s24 }
 0xa24   :  { %v2267_v5 = vpop.f32.mrf.mxu0 }
 0xa27   :  { %851 = vrot.lane.b32.xlu0 %v846_v51, %s2452_s27 }
 0xa2b   :  { %855 = vrot.lane.b32.xlu0 %v829_v48, %s2468_s23 }
 0xa2f   :  { %859 = vrot.lane.b32.xlu0 %v847_v9, %s2470_s24 }
 0xa32   :  { %v1917_v41 = vpop.f32.mrf.mxu1 }
 0xa33   :  { %863 = vrot.lane.b32.xlu0 %v838_v37, %s2471_s25  ;;  %1925 = vrot.lane.b32.xlu1 %v1917_v41, %s2470_s24 }
 0xa34   :  { %v2272_v10 = vpop.f32.mrf.mxu1 }
 0xa37   :  { %867 = vrot.lane.b32.xlu0 %v848_v11, %s2467_s22  ;;  %1735 = vrot.lane.b32.xlu1 %v1730_v18, %s2452_s27 }
 0xa3b   :  { %871 = vrot.lane.b32.xlu0 %v845_v45, %s2464_s19  ;;  %1739 = vrot.lane.b32.xlu1 %v1713_v1, %s2468_s23 }
 0xa3f   :  { %875 = vrot.lane.b32.xlu0 %v849_v3, %s2461_s16  ;;  %1743 = vrot.lane.b32.xlu1 %v1731_v12, %s2470_s24 }
 0xa43   :  { %412 = vrot.lane.b32.xlu0 %v407_v42, %s2452_s27  ;;  %1747 = vrot.lane.b32.xlu1 %v1722_v43, %s2471_s25 }
 0xa47   :  { %416 = vrot.lane.b32.xlu0 %v390_v46, %s2468_s23  ;;  %1751 = vrot.lane.b32.xlu1 %v1732_v58, %s2467_s22 }
 0xa4b   :  { %420 = vrot.lane.b32.xlu0 %v408_v15, %s2470_s24  ;;  %1755 = vrot.lane.b32.xlu1 %v1729_v16, %s2464_s19 }
 0xa4f   :  { %424 = vrot.lane.b32.xlu0 %v399_v55, %s2471_s25  ;;  %1759 = vrot.lane.b32.xlu1 %v1733_v56, %s2461_s16 }
 0xa53   :  { %428 = vrot.lane.b32.xlu0 %v409_v17, %s2467_s22  ;;  %1293 = vrot.lane.b32.xlu1 %v1288_v20, %s2452_s27 }
 0xa57   :  { %432 = vrot.lane.b32.xlu0 %v406_v63, %s2464_s19  ;;  %1297 = vrot.lane.b32.xlu1 %v1271_v31, %s2468_s23 }
 0xa5b   :  { %436 = vrot.lane.b32.xlu0 %v410_v21, %s2461_s16  ;;  %1301 = vrot.lane.b32.xlu1 %v1289_v22, %s2470_s24 }
 0xa5f   :  { %1305 = vrot.lane.b32.xlu1 %v1280_v60, %s2471_s25 }
 0xa63   :  { %1309 = vrot.lane.b32.xlu1 %v1290_v61, %s2467_s22 }
 0xa67   :  { %1313 = vrot.lane.b32.xlu1 %v1287_v0, %s2464_s19 }
 0xa6b   :  { %1317 = vrot.lane.b32.xlu1 %v1291_v28, %s2461_s16 }
 0xa95   :  { %v1924_v29 = vpop.permute.xlu0 %1923 }
 0xa96   :  { %1930 = vst.msk [vmem:[#allocation2] sm:$0xff] %vm1929_vm5, %v1924_v29 }
 0xa99   :  { %v852_v32 = vpop.permute.xlu0 %851 }
 0xa9a   :  { %v878_v14 = vsel %vm171_vm2, %v2754_v2, %v852_v32 }
 0xa9d   :  { %v856_v36 = vpop.permute.xlu0 %855  ;;  %v1955_v23 = vld [vmem:[#allocation2] sm:$0xff] }
 0xa9e   :  { %2281 = vmatprep.mubr.msk.f32.mxu0 %vm444_vm6, %v1955_v23  ;;  %v879_v39 = vsel %vm440_vm7, %v878_v14, %v856_v36 }
 0xaa1   :  { %v860_v24 = vpop.permute.xlu0 %859 }
 0xaa2   :  { %v880_v35 = vsel %vm442_vm8, %v879_v39, %v860_v24 }
 0xaa5   :  { %v864_v25 = vpop.permute.xlu0 %863  ;;  %v1926_v26 = vpop.permute.xlu1 %1925 }
 0xaa6   :  { %1931 = vst.msk [vmem:[#allocation2 + $0x8] sm:$0xff] %vm1929_vm5, %v1926_v26  ;;  %v881_v44 = vsel %vm444_vm6, %v880_v35, %v864_v25 }
 0xaa9   :  { %v868_v33 = vpop.permute.xlu0 %867  ;;  %v1736_v34 = vpop.permute.xlu1 %1735 }
 0xaaa   :  { %v882_v47 = vsel %vm446_vm9, %v881_v44, %v868_v33  ;;  %v1762_v4 = vsel %vm171_vm2, %v2772_v38, %v1736_v34 }
 0xaad   :  { %v872_v19 = vpop.permute.xlu0 %871  ;;  %v1740_v27 = vpop.permute.xlu1 %1739  ;;  %v1956_v30 = vld [vmem:[#allocation2 + $0x8] sm:$0xff] }
 0xaae   :  { %2282 = vmatmul.mubr.msk.f32.vlgmr.msra.gmra.mxu0 %vm444_vm6, %v1956_v30  ;;  %v883_v49 = vsel %vm448_vm10, %v882_v47, %v872_v19  ;;  %v1763_v51 = vsel %vm440_vm7, %v1762_v4, %v1740_v27 }
 0xab1   :  { %v876_v50 = vpop.permute.xlu0 %875  ;;  %v1744_v52 = vpop.permute.xlu1 %1743 }
 0xab2   :  { %v884_v53 = vsel %vm450_vm11, %v883_v49, %v876_v50  ;;  %v1764_v40 = vsel %vm442_vm8, %v1763_v51, %v1744_v52 }
 0xab3   :  { %1933 = vrot.lane.b32.xlu0 %v884_v53, %s2457_s2 }
 0xab5   :  { %v413_v54 = vpop.permute.xlu0 %412  ;;  %v1748_v57 = vpop.permute.xlu1 %1747 }
 0xab6   :  { %v439_v5 = vsel %vm171_vm2, %v2794_v13, %v413_v54  ;;  %v1765_v9 = vsel %vm444_vm6, %v1764_v40, %v1748_v57 }
 0xab9   :  { %v417_v62 = vpop.permute.xlu0 %416  ;;  %v1752_v2 = vpop.permute.xlu1 %1751 }
 0xaba   :  { %v441_v6 = vsel %vm440_vm7, %v439_v5, %v417_v62  ;;  %v1766_v37 = vsel %vm446_vm9, %v1765_v9, %v1752_v2 }
 0xabd   :  { %v421_v7 = vpop.permute.xlu0 %420  ;;  %v1756_v48 = vpop.permute.xlu1 %1755 }
 0xabe   :  { %v443_v8 = vsel %vm442_vm8, %v441_v6, %v421_v7  ;;  %v1767_v41 = vsel %vm448_vm10, %v1766_v37, %v1756_v48 }
 0xac1   :  { %v425_v38 = vpop.permute.xlu0 %424  ;;  %v1760_v10 = vpop.permute.xlu1 %1759 }
 0xac2   :  { %v1768_v11 = vsel %vm450_vm11, %v1767_v41, %v1760_v10  ;;  %v445_v18 = vsel %vm444_vm6, %v443_v8, %v425_v38 }
 0xac3   :  { %1937 = vrot.lane.b32.xlu1 %v1768_v11, %s2457_s2 }
 0xac5   :  { %v429_v45 = vpop.permute.xlu0 %428  ;;  %v1294_v1 = vpop.permute.xlu1 %1293 }
 0xac6   :  { %v447_v3 = vsel %vm446_vm9, %v445_v18, %v429_v45  ;;  %v1320_v43 = vsel %vm171_vm2, %v2823_v59, %v1294_v1 }
 0xac9   :  { %v433_v12 = vpop.permute.xlu0 %432  ;;  %v1298_v13 = vpop.permute.xlu1 %1297 }
 0xaca   :  { %v449_v42 = vsel %vm448_vm10, %v447_v3, %v433_v12  ;;  %v1321_v46 = vsel %vm440_vm7, %v1320_v43, %v1298_v13 }
 0xacd   :  { %v437_v58 = vpop.permute.xlu0 %436  ;;  %v1302_v15 = vpop.permute.xlu1 %1301 }
 0xace   :  { %v451_v16 = vsel %vm450_vm11, %v449_v42, %v437_v58  ;;  %v1322_v55 = vsel %vm442_vm8, %v1321_v46, %v1302_v15 }
 0xad1   :  { %v1306_v56 = vpop.permute.xlu1 %1305 }
 0xad2   :  { %v1323_v17 = vsel %vm444_vm6, %v1322_v55, %v1306_v56 }
 0xad5   :  { %v1310_v20 = vpop.permute.xlu1 %1309 }
 0xad6   :  { %v1324_v63 = vsel %vm446_vm9, %v1323_v17, %v1310_v20 }
 0xad9   :  { %v1314_v31 = vpop.permute.xlu1 %1313 }
 0xada   :  { %v1325_v21 = vsel %vm448_vm10, %v1324_v63, %v1314_v31 }
 0xadd   :  { %v1318_v22 = vpop.permute.xlu1 %1317 }
 0xade   :  { %v1326_v59 = vsel %vm450_vm11, %v1325_v21, %v1318_v22 }
 0xb25   :  { %v1934_v60 = vpop.permute.xlu0 %1933 }
 0xb26   :  { %v1941_v0 = vsel %vm1940_vm12, %v451_v16, %v1934_v60 }
 0xb35   :  { %v1938_v61 = vpop.permute.xlu1 %1937 }
 0xb36   :  { %v1942_v28 = vsel %vm1940_vm12, %v1326_v59, %v1938_v61 }
 0xb37   :  { %v1945_v29 = vcombine.low %v1941_v0, %v1942_v28 }
 0xb39   :  { %2110 = vst.sshfl [vmem:[#allocation10] sm:$0x33 pattern:$0x76325410] %v1945_v29 }
 0xb3a   :  { %2412 = shalt.err (!%p2409_p5)
}
 0xb3b   :  { %2072 = dma.vmem_to_hbm [thread:$0]  %s2070_s29, 64, %s2916_s6, [#allocation11]   ;;  %v2111_v32 = vld [vmem:[%s2914_s4] ss:$0 sm:$0xff] }
 0xb3c   :  { %s2473_s11 = smov [#allocation9]  }
 0xb3d   :  { %s2056_s1 = sshll.u32 %s2473_s11, 4  ;;  %s2057_s1 = int_to_ptr.vmem [resolvable:$true] %s2056_s1 }
 0xb3e   :  { %s2421_s12 = scalar_lea.vmem %s2057_s1, 256  ;;  %p2426_p7 = scmp.lt.s32.totalorder %s2057_s1, %s2057_s1 }
 0xb3f   :  { %p2422_p6 = scmp.ne.s32.totalorder %s2057_s1, %s2421_s12  ;;  %p2427_p8 = scmp.lt.s32.totalorder %s2421_s12, %s2421_s12 }
 0xb41   :  { %p2428_p9 = por %p2427_p8, %p2426_p7 }
 0xb43   :  { %p2429_p10 = pnand %p2428_p9, %p2422_p6 }
 0xb6e   :  { %v2283_v36 = vpop.f32.mrf.mxu0 }
 0xb6f   :  { %v2046_v23 = vadd.f32 %v2283_v36, %v2111_v32 }
 0xb70   :  { %v2040_v24 = vpop.f32.mrf.mxu0 }
 0xb71   :  { %2050 = vst.msk [vmem:[#allocation9 + $0x8] sm:$0xff] %vm444_vm6, %v2046_v23  ;;  %v2041_v25 = vadd.f32 %v2111_v32, %v2040_v24 }
 0xb73   :  { %2049 = vst.msk [vmem:[#allocation9] sm:$0xff] %vm444_vm6, %v2041_v25 }
 0xb74   :  { %2432 = shalt.err (!%p2429_p10)
}
 0xb75   :  { %2062 = dma.vmem_to_hbm [thread:$0]  %s2057_s1, 256, %s2915_s5, [#allocation5], %s2451_s26, %s2451_s26, %s2452_s27  }
 0xb76   :  { %2445 = dma.done.wait [#allocation5], 256  }
 0xb77   :  { %2446 = vsyncadd [#allocation5], 4294967040 }
 0xb78   :  { %2447 = dma.done.wait [#allocation11], 64  }
 0xb79   :  { %2448 = vsyncadd [#allocation11], 4294967232 }
 0xb7a   :  { %2079 = vsyncpa [#allocation4], 1 }
 0xb7b   :  { %2080 = vsyncpa [#allocation7], 1 }
 0xb7c   :  { %2081 = vsyncpa [#allocation5], 1 }
 0xb7d   :  { %2082 = vsyncpa [#allocation11], 1 }

</bundles_post_ra>
